<compile_context>
chip_gen: v5e
topology: v5e:2x2
jax: 0.10.0
libtpu: 0.0.40
codegen_flags: <defaults>
</compile_context>

<pallas_src>
import jax
import jax.numpy as jnp
from jax.experimental import pallas as pl
from jax.experimental.pallas import tpu as pltpu

STATE_DIM = 10
ACTION_DIM = 7
HIDDEN_SIZE = 256
IN_DIM = STATE_DIM + ACTION_DIM
LN_EPS = 1e-5


def _layernorm_fast(h, gamma, beta):
    # LayerNorm over the last (feature) axis; independent reductions so the
    # two cross-lane sums are not serialized (var = E[h^2] - mean^2).
    n = h.shape[-1]
    inv_n = 1.0 / n
    s1 = jnp.sum(h, axis=-1, keepdims=True)
    s2 = jnp.sum(h * h, axis=-1, keepdims=True)
    mean = s1 * inv_n
    var = s2 * inv_n - mean * mean
    inv = jax.lax.rsqrt(var + LN_EPS)
    return (h - mean) * inv * gamma + beta


def critic_kernel(state_ref, action_ref,
                  w1s_ref, w1a_ref, b1_ref, g1_ref, be1_ref,
                  w2_ref, b2_ref, g2_ref, be2_ref,
                  w3r_ref, b3_ref,
                  q_ref):
    s = state_ref[...]   # [B, 10]
    a = action_ref[...]  # [B, 7]

    # Fused layer 1 for both heads: [B, 2*H]. The concat of state/action is
    # folded into a split matmul (state @ W1[:10] + action @ W1[10:]).
    h1_both = (jnp.dot(s, w1s_ref[...], preferred_element_type=jnp.float32)
               + jnp.dot(a, w1a_ref[...], preferred_element_type=jnp.float32)
               + b1_ref[...])

    def head(h):
        lo = h * HIDDEN_SIZE  # static (Python int) -> free lane-aligned slices
        h1 = h1_both[:, lo:lo + HIDDEN_SIZE]                        # [B, 256]
        h1 = _layernorm_fast(h1,
                             g1_ref[:, lo:lo + HIDDEN_SIZE],
                             be1_ref[:, lo:lo + HIDDEN_SIZE])
        h1 = jnp.maximum(h1, 0.0)

        h2 = jnp.dot(h1, w2_ref[h], preferred_element_type=jnp.float32) + b2_ref[h]
        h2 = _layernorm_fast(h2, g2_ref[h], be2_ref[h])
        h2 = jnp.maximum(h2, 0.0)

        # 256 -> 1 projection as VPU multiply + lane reduction (no N=1 MXU pass).
        return jnp.sum(h2 * w3r_ref[h], axis=-1, keepdims=True)     # [B, 1]

    q_ref[...] = jnp.concatenate([head(0), head(1)], axis=-1) + b3_ref[...]


def make_params(key):
    """PyTorch-default-style init; both heads stacked on a leading axis of 2.

    Linear: U(-1/sqrt(fan_in), 1/sqrt(fan_in)) for weight & bias.
    LayerNorm: gamma=1, beta=0.
    """
    ks = jax.random.split(key, 6)

    def lin(kw, kb, fan_in, fan_out):
        bound = 1.0 / jnp.sqrt(jnp.float32(fan_in))
        w = jax.random.uniform(kw, (2, fan_in, fan_out), jnp.float32, -bound, bound)
        b = jax.random.uniform(kb, (2, 1, fan_out), jnp.float32, -bound, bound)
        return w, b

    w1, b1 = lin(ks[0], ks[1], IN_DIM, HIDDEN_SIZE)
    w2, b2 = lin(ks[2], ks[3], HIDDEN_SIZE, HIDDEN_SIZE)
    w3, b3 = lin(ks[4], ks[5], HIDDEN_SIZE, 1)
    g1 = jnp.ones((2, 1, HIDDEN_SIZE), jnp.float32)
    be1 = jnp.zeros((2, 1, HIDDEN_SIZE), jnp.float32)
    g2 = jnp.ones((2, 1, HIDDEN_SIZE), jnp.float32)
    be2 = jnp.zeros((2, 1, HIDDEN_SIZE), jnp.float32)
    return (w1, b1, g1, be1, w2, b2, g2, be2, w3, b3)


def pack_params(params):
    """Repack PyTorch-style stacked params into the fused kernel layout."""
    (w1, b1, g1, be1, w2, b2, g2, be2, w3, b3) = params
    w1f = jnp.concatenate([w1[0], w1[1]], axis=-1)     # [17, 512]
    w1s = w1f[:STATE_DIM]                              # [10, 512]
    w1a = w1f[STATE_DIM:]                              # [7, 512]
    b1f = jnp.concatenate([b1[0], b1[1]], axis=-1)     # [1, 512]
    g1f = jnp.concatenate([g1[0], g1[1]], axis=-1)     # [1, 512]
    be1f = jnp.concatenate([be1[0], be1[1]], axis=-1)  # [1, 512]
    w3r = jnp.transpose(w3, (0, 2, 1))                 # [2, 1, 256]
    b3f = b3.reshape(1, 2)                             # [1, 2]
    return (w1s, w1a, b1f, g1f, be1f, w2, b2, g2, be2, w3r, b3f)


def critic_forward(state, action, packed_params):
    B = state.shape[0]
    args = (state.astype(jnp.float32), action.astype(jnp.float32)) + tuple(packed_params)

    vmem = pl.BlockSpec(memory_space=pltpu.MemorySpace.VMEM)

    flops = (2 * B * IN_DIM * (2 * HIDDEN_SIZE)            # fused layer 1
             + 2 * (2 * B * HIDDEN_SIZE * HIDDEN_SIZE)     # layer 2 (x2 heads)
             + 2 * (2 * B * HIDDEN_SIZE))                  # layer 3 (x2 heads)
    bytes_accessed = sum(int(a.size) * a.dtype.itemsize for a in args) + B * 2 * 4

    q_both = pl.pallas_call(
        critic_kernel,
        out_shape=jax.ShapeDtypeStruct((B, 2), jnp.float32),
        in_specs=[vmem] * len(args),
        out_specs=vmem,
        cost_estimate=pl.CostEstimate(
            flops=flops, transcendentals=4 * B, bytes_accessed=bytes_accessed),
    )(*args)

    return q_both[:, 0:1], q_both[:, 1:2]


def critic_forward_ref(state, action, params):
    # Pure-JAX reference matching nn.LayerNorm / nn.Linear semantics.
    (w1, b1, g1, be1, w2, b2, g2, be2, w3, b3) = params
    x = jnp.concatenate([state, action], axis=1).astype(jnp.float32)

    def layernorm(h, gamma, beta):
        mean = jnp.mean(h, axis=-1, keepdims=True)
        var = jnp.mean((h - mean) ** 2, axis=-1, keepdims=True)
        return (h - mean) * jax.lax.rsqrt(var + LN_EPS) * gamma + beta

    def head(h):
        h1 = x @ w1[h] + b1[h]
        h1 = jnp.maximum(layernorm(h1, g1[h], be1[h]), 0.0)
        h2 = h1 @ w2[h] + b2[h]
        h2 = jnp.maximum(layernorm(h2, g2[h], be2[h]), 0.0)
        return h2 @ w3[h] + b3[h]

    return head(0), head(1)


if __name__ == "__main__":
    key = jax.random.PRNGKey(0)
    k_param, k_state, k_action = jax.random.split(key, 3)

    B = 8
    state = jax.random.normal(k_state, (B, STATE_DIM), jnp.float32)
    action = jax.random.normal(k_action, (B, ACTION_DIM), jnp.float32)
    params = make_params(k_param)
    packed = pack_params(params)

    q1, q2 = critic_forward(state, action, packed)
    jax.block_until_ready((q1, q2))

    r1, r2 = critic_forward_ref(state, action, params)
    assert q1.shape == (B, 1) and q2.shape == (B, 1)
    assert jnp.allclose(q1, r1, atol=1e-4, rtol=1e-4)
    assert jnp.allclose(q2, r2, atol=1e-4, rtol=1e-4)

    print("KERNEL_OK")
</pallas_src>

<mosaic_0001>
module attributes {stable_mosaic.version = 11 : i64} {
  func.func @critic_kernel(%arg0: memref<8x10xf32, #tpu.memory_space<vmem>>, %arg1: memref<8x7xf32, #tpu.memory_space<vmem>>, %arg2: memref<10x512xf32, #tpu.memory_space<vmem>>, %arg3: memref<7x512xf32, #tpu.memory_space<vmem>>, %arg4: memref<1x512xf32, #tpu.memory_space<vmem>>, %arg5: memref<1x512xf32, #tpu.memory_space<vmem>>, %arg6: memref<1x512xf32, #tpu.memory_space<vmem>>, %arg7: memref<2x256x256xf32, #tpu.memory_space<vmem>>, %arg8: memref<2x1x256xf32, #tpu.memory_space<vmem>>, %arg9: memref<2x1x256xf32, #tpu.memory_space<vmem>>, %arg10: memref<2x1x256xf32, #tpu.memory_space<vmem>>, %arg11: memref<2x1x256xf32, #tpu.memory_space<vmem>>, %arg12: memref<1x2xf32, #tpu.memory_space<vmem>>, %arg13: memref<8x2xf32, #tpu.memory_space<vmem>>) attributes {dimension_semantics = [], scalar_prefetch = 0 : i64, scratch_operands = 0 : i64, tpu.core_type = #tpu.core_type<tc>} {
    %c0 = arith.constant 0 : index
    %c0_0 = arith.constant 0 : index
    %0 = vector.load %arg0[%c0, %c0_0] : memref<8x10xf32, #tpu.memory_space<vmem>>, vector<8x10xf32>
    %c0_1 = arith.constant 0 : index
    %c0_2 = arith.constant 0 : index
    %1 = vector.load %arg1[%c0_1, %c0_2] : memref<8x7xf32, #tpu.memory_space<vmem>>, vector<8x7xf32>
    %c0_3 = arith.constant 0 : index
    %c0_4 = arith.constant 0 : index
    %2 = vector.load %arg2[%c0_3, %c0_4] : memref<10x512xf32, #tpu.memory_space<vmem>>, vector<10x512xf32>
    %cst = arith.constant dense<0.000000e+00> : vector<8x512xf32>
    %3 = tpu.matmul %0, %2, %cst {dimension_numbers = #tpu.dot_dimension_numbers<[1], [0], [0], [1], [0, 0, 1, 1], [], []>} : vector<8x10xf32>, vector<10x512xf32>, vector<8x512xf32> -> vector<8x512xf32>
    %c0_5 = arith.constant 0 : index
    %c0_6 = arith.constant 0 : index
    %4 = vector.load %arg3[%c0_5, %c0_6] : memref<7x512xf32, #tpu.memory_space<vmem>>, vector<7x512xf32>
    %cst_7 = arith.constant dense<0.000000e+00> : vector<8x512xf32>
    %5 = tpu.matmul %1, %4, %cst_7 {dimension_numbers = #tpu.dot_dimension_numbers<[1], [0], [0], [1], [0, 0, 1, 1], [], []>} : vector<8x7xf32>, vector<7x512xf32>, vector<8x512xf32> -> vector<8x512xf32>
    %6 = arith.addf %3, %5 : vector<8x512xf32>
    %c0_8 = arith.constant 0 : index
    %c0_9 = arith.constant 0 : index
    %7 = vector.load %arg4[%c0_8, %c0_9] : memref<1x512xf32, #tpu.memory_space<vmem>>, vector<1x512xf32>
    %8 = vector.broadcast %7 : vector<1x512xf32> to vector<8x512xf32>
    %9 = arith.addf %6, %8 : vector<8x512xf32>
    %10 = vector.extract_strided_slice %9 {offsets = [0, 0], sizes = [8, 256], strides = [1, 1]} : vector<8x512xf32> to vector<8x256xf32>
    %c0_10 = arith.constant 0 : index
    %c0_11 = arith.constant 0 : index
    %11 = vector.load %arg5[%c0_10, %c0_11] : memref<1x512xf32, #tpu.memory_space<vmem>>, vector<1x256xf32>
    %c0_12 = arith.constant 0 : index
    %c0_13 = arith.constant 0 : index
    %12 = vector.load %arg6[%c0_12, %c0_13] : memref<1x512xf32, #tpu.memory_space<vmem>>, vector<1x256xf32>
    %cst_14 = arith.constant dense<0.000000e+00> : vector<8xf32>
    %13 = vector.multi_reduction <add>, %10, %cst_14 [1] : vector<8x256xf32> to vector<8xf32>
    %14 = vector.shape_cast %13 : vector<8xf32> to vector<8x1xf32>
    %15 = arith.mulf %10, %10 : vector<8x256xf32>
    %cst_15 = arith.constant dense<0.000000e+00> : vector<8xf32>
    %16 = vector.multi_reduction <add>, %15, %cst_15 [1] : vector<8x256xf32> to vector<8xf32>
    %17 = vector.shape_cast %16 : vector<8xf32> to vector<8x1xf32>
    %cst_16 = arith.constant 3.906250e-03 : f32
    %18 = vector.broadcast %cst_16 : f32 to vector<8x1xf32>
    %19 = arith.mulf %14, %18 : vector<8x1xf32>
    %cst_17 = arith.constant 3.906250e-03 : f32
    %20 = vector.broadcast %cst_17 : f32 to vector<8x1xf32>
    %21 = arith.mulf %17, %20 : vector<8x1xf32>
    %22 = arith.mulf %19, %19 : vector<8x1xf32>
    %23 = arith.subf %21, %22 : vector<8x1xf32>
    %cst_18 = arith.constant 9.99999974E-6 : f32
    %24 = vector.broadcast %cst_18 : f32 to vector<8x1xf32>
    %25 = arith.addf %23, %24 : vector<8x1xf32>
    %26 = math.rsqrt %25 : vector<8x1xf32>
    %27 = vector.broadcast %19 : vector<8x1xf32> to vector<8x256xf32>
    %28 = arith.subf %10, %27 : vector<8x256xf32>
    %29 = vector.broadcast %26 : vector<8x1xf32> to vector<8x256xf32>
    %30 = arith.mulf %28, %29 : vector<8x256xf32>
    %31 = vector.broadcast %11 : vector<1x256xf32> to vector<8x256xf32>
    %32 = arith.mulf %30, %31 : vector<8x256xf32>
    %33 = vector.broadcast %12 : vector<1x256xf32> to vector<8x256xf32>
    %34 = arith.addf %32, %33 : vector<8x256xf32>
    %cst_19 = arith.constant 0.000000e+00 : f32
    %35 = vector.broadcast %cst_19 : f32 to vector<8x256xf32>
    %36 = arith.maximumf %34, %35 : vector<8x256xf32>
    %c0_20 = arith.constant 0 : index
    %c0_21 = arith.constant 0 : index
    %c0_22 = arith.constant 0 : index
    %37 = vector.load %arg7[%c0_20, %c0_21, %c0_22] : memref<2x256x256xf32, #tpu.memory_space<vmem>>, vector<1x256x256xf32>
    %38 = vector.shape_cast %37 : vector<1x256x256xf32> to vector<256x256xf32>
    %cst_23 = arith.constant dense<0.000000e+00> : vector<8x256xf32>
    %39 = tpu.matmul %36, %38, %cst_23 {dimension_numbers = #tpu.dot_dimension_numbers<[1], [0], [0], [1], [0, 0, 1, 1], [], []>} : vector<8x256xf32>, vector<256x256xf32>, vector<8x256xf32> -> vector<8x256xf32>
    %c0_24 = arith.constant 0 : index
    %c0_25 = arith.constant 0 : index
    %c0_26 = arith.constant 0 : index
    %40 = vector.load %arg8[%c0_24, %c0_25, %c0_26] : memref<2x1x256xf32, #tpu.memory_space<vmem>>, vector<1x1x256xf32>
    %41 = vector.shape_cast %40 : vector<1x1x256xf32> to vector<1x256xf32>
    %42 = vector.broadcast %41 : vector<1x256xf32> to vector<8x256xf32>
    %43 = arith.addf %39, %42 : vector<8x256xf32>
    %c0_27 = arith.constant 0 : index
    %c0_28 = arith.constant 0 : index
    %c0_29 = arith.constant 0 : index
    %44 = vector.load %arg9[%c0_27, %c0_28, %c0_29] : memref<2x1x256xf32, #tpu.memory_space<vmem>>, vector<1x1x256xf32>
    %45 = vector.shape_cast %44 : vector<1x1x256xf32> to vector<1x256xf32>
    %c0_30 = arith.constant 0 : index
    %c0_31 = arith.constant 0 : index
    %c0_32 = arith.constant 0 : index
    %46 = vector.load %arg10[%c0_30, %c0_31, %c0_32] : memref<2x1x256xf32, #tpu.memory_space<vmem>>, vector<1x1x256xf32>
    %47 = vector.shape_cast %46 : vector<1x1x256xf32> to vector<1x256xf32>
    %cst_33 = arith.constant dense<0.000000e+00> : vector<8xf32>
    %48 = vector.multi_reduction <add>, %43, %cst_33 [1] : vector<8x256xf32> to vector<8xf32>
    %49 = vector.shape_cast %48 : vector<8xf32> to vector<8x1xf32>
    %50 = arith.mulf %43, %43 : vector<8x256xf32>
    %cst_34 = arith.constant dense<0.000000e+00> : vector<8xf32>
    %51 = vector.multi_reduction <add>, %50, %cst_34 [1] : vector<8x256xf32> to vector<8xf32>
    %52 = vector.shape_cast %51 : vector<8xf32> to vector<8x1xf32>
    %cst_35 = arith.constant 3.906250e-03 : f32
    %53 = vector.broadcast %cst_35 : f32 to vector<8x1xf32>
    %54 = arith.mulf %49, %53 : vector<8x1xf32>
    %cst_36 = arith.constant 3.906250e-03 : f32
    %55 = vector.broadcast %cst_36 : f32 to vector<8x1xf32>
    %56 = arith.mulf %52, %55 : vector<8x1xf32>
    %57 = arith.mulf %54, %54 : vector<8x1xf32>
    %58 = arith.subf %56, %57 : vector<8x1xf32>
    %cst_37 = arith.constant 9.99999974E-6 : f32
    %59 = vector.broadcast %cst_37 : f32 to vector<8x1xf32>
    %60 = arith.addf %58, %59 : vector<8x1xf32>
    %61 = math.rsqrt %60 : vector<8x1xf32>
    %62 = vector.broadcast %54 : vector<8x1xf32> to vector<8x256xf32>
    %63 = arith.subf %43, %62 : vector<8x256xf32>
    %64 = vector.broadcast %61 : vector<8x1xf32> to vector<8x256xf32>
    %65 = arith.mulf %63, %64 : vector<8x256xf32>
    %66 = vector.broadcast %45 : vector<1x256xf32> to vector<8x256xf32>
    %67 = arith.mulf %65, %66 : vector<8x256xf32>
    %68 = vector.broadcast %47 : vector<1x256xf32> to vector<8x256xf32>
    %69 = arith.addf %67, %68 : vector<8x256xf32>
    %cst_38 = arith.constant 0.000000e+00 : f32
    %70 = vector.broadcast %cst_38 : f32 to vector<8x256xf32>
    %71 = arith.maximumf %69, %70 : vector<8x256xf32>
    %c0_39 = arith.constant 0 : index
    %c0_40 = arith.constant 0 : index
    %c0_41 = arith.constant 0 : index
    %72 = vector.load %arg11[%c0_39, %c0_40, %c0_41] : memref<2x1x256xf32, #tpu.memory_space<vmem>>, vector<1x1x256xf32>
    %73 = vector.shape_cast %72 : vector<1x1x256xf32> to vector<1x256xf32>
    %74 = vector.broadcast %73 : vector<1x256xf32> to vector<8x256xf32>
    %75 = arith.mulf %71, %74 : vector<8x256xf32>
    %cst_42 = arith.constant dense<0.000000e+00> : vector<8xf32>
    %76 = vector.multi_reduction <add>, %75, %cst_42 [1] : vector<8x256xf32> to vector<8xf32>
    %77 = vector.shape_cast %76 : vector<8xf32> to vector<8x1xf32>
    %78 = vector.extract_strided_slice %9 {offsets = [0, 256], sizes = [8, 256], strides = [1, 1]} : vector<8x512xf32> to vector<8x256xf32>
    %c0_43 = arith.constant 0 : index
    %c256 = arith.constant 256 : index
    %79 = vector.load %arg5[%c0_43, %c256] : memref<1x512xf32, #tpu.memory_space<vmem>>, vector<1x256xf32>
    %c0_44 = arith.constant 0 : index
    %c256_45 = arith.constant 256 : index
    %80 = vector.load %arg6[%c0_44, %c256_45] : memref<1x512xf32, #tpu.memory_space<vmem>>, vector<1x256xf32>
    %cst_46 = arith.constant dense<0.000000e+00> : vector<8xf32>
    %81 = vector.multi_reduction <add>, %78, %cst_46 [1] : vector<8x256xf32> to vector<8xf32>
    %82 = vector.shape_cast %81 : vector<8xf32> to vector<8x1xf32>
    %83 = arith.mulf %78, %78 : vector<8x256xf32>
    %cst_47 = arith.constant dense<0.000000e+00> : vector<8xf32>
    %84 = vector.multi_reduction <add>, %83, %cst_47 [1] : vector<8x256xf32> to vector<8xf32>
    %85 = vector.shape_cast %84 : vector<8xf32> to vector<8x1xf32>
    %cst_48 = arith.constant 3.906250e-03 : f32
    %86 = vector.broadcast %cst_48 : f32 to vector<8x1xf32>
    %87 = arith.mulf %82, %86 : vector<8x1xf32>
    %cst_49 = arith.constant 3.906250e-03 : f32
    %88 = vector.broadcast %cst_49 : f32 to vector<8x1xf32>
    %89 = arith.mulf %85, %88 : vector<8x1xf32>
    %90 = arith.mulf %87, %87 : vector<8x1xf32>
    %91 = arith.subf %89, %90 : vector<8x1xf32>
    %cst_50 = arith.constant 9.99999974E-6 : f32
    %92 = vector.broadcast %cst_50 : f32 to vector<8x1xf32>
    %93 = arith.addf %91, %92 : vector<8x1xf32>
    %94 = math.rsqrt %93 : vector<8x1xf32>
    %95 = vector.broadcast %87 : vector<8x1xf32> to vector<8x256xf32>
    %96 = arith.subf %78, %95 : vector<8x256xf32>
    %97 = vector.broadcast %94 : vector<8x1xf32> to vector<8x256xf32>
    %98 = arith.mulf %96, %97 : vector<8x256xf32>
    %99 = vector.broadcast %79 : vector<1x256xf32> to vector<8x256xf32>
    %100 = arith.mulf %98, %99 : vector<8x256xf32>
    %101 = vector.broadcast %80 : vector<1x256xf32> to vector<8x256xf32>
    %102 = arith.addf %100, %101 : vector<8x256xf32>
    %cst_51 = arith.constant 0.000000e+00 : f32
    %103 = vector.broadcast %cst_51 : f32 to vector<8x256xf32>
    %104 = arith.maximumf %102, %103 : vector<8x256xf32>
    %c1 = arith.constant 1 : index
    %c0_52 = arith.constant 0 : index
    %c0_53 = arith.constant 0 : index
    %105 = vector.load %arg7[%c1, %c0_52, %c0_53] : memref<2x256x256xf32, #tpu.memory_space<vmem>>, vector<1x256x256xf32>
    %106 = vector.shape_cast %105 : vector<1x256x256xf32> to vector<256x256xf32>
    %cst_54 = arith.constant dense<0.000000e+00> : vector<8x256xf32>
    %107 = tpu.matmul %104, %106, %cst_54 {dimension_numbers = #tpu.dot_dimension_numbers<[1], [0], [0], [1], [0, 0, 1, 1], [], []>} : vector<8x256xf32>, vector<256x256xf32>, vector<8x256xf32> -> vector<8x256xf32>
    %c1_55 = arith.constant 1 : index
    %c0_56 = arith.constant 0 : index
    %c0_57 = arith.constant 0 : index
    %108 = vector.load %arg8[%c1_55, %c0_56, %c0_57] : memref<2x1x256xf32, #tpu.memory_space<vmem>>, vector<1x1x256xf32>
    %109 = vector.shape_cast %108 : vector<1x1x256xf32> to vector<1x256xf32>
    %110 = vector.broadcast %109 : vector<1x256xf32> to vector<8x256xf32>
    %111 = arith.addf %107, %110 : vector<8x256xf32>
    %c1_58 = arith.constant 1 : index
    %c0_59 = arith.constant 0 : index
    %c0_60 = arith.constant 0 : index
    %112 = vector.load %arg9[%c1_58, %c0_59, %c0_60] : memref<2x1x256xf32, #tpu.memory_space<vmem>>, vector<1x1x256xf32>
    %113 = vector.shape_cast %112 : vector<1x1x256xf32> to vector<1x256xf32>
    %c1_61 = arith.constant 1 : index
    %c0_62 = arith.constant 0 : index
    %c0_63 = arith.constant 0 : index
    %114 = vector.load %arg10[%c1_61, %c0_62, %c0_63] : memref<2x1x256xf32, #tpu.memory_space<vmem>>, vector<1x1x256xf32>
    %115 = vector.shape_cast %114 : vector<1x1x256xf32> to vector<1x256xf32>
    %cst_64 = arith.constant dense<0.000000e+00> : vector<8xf32>
    %116 = vector.multi_reduction <add>, %111, %cst_64 [1] : vector<8x256xf32> to vector<8xf32>
    %117 = vector.shape_cast %116 : vector<8xf32> to vector<8x1xf32>
    %118 = arith.mulf %111, %111 : vector<8x256xf32>
    %cst_65 = arith.constant dense<0.000000e+00> : vector<8xf32>
    %119 = vector.multi_reduction <add>, %118, %cst_65 [1] : vector<8x256xf32> to vector<8xf32>
    %120 = vector.shape_cast %119 : vector<8xf32> to vector<8x1xf32>
    %cst_66 = arith.constant 3.906250e-03 : f32
    %121 = vector.broadcast %cst_66 : f32 to vector<8x1xf32>
    %122 = arith.mulf %117, %121 : vector<8x1xf32>
    %cst_67 = arith.constant 3.906250e-03 : f32
    %123 = vector.broadcast %cst_67 : f32 to vector<8x1xf32>
    %124 = arith.mulf %120, %123 : vector<8x1xf32>
    %125 = arith.mulf %122, %122 : vector<8x1xf32>
    %126 = arith.subf %124, %125 : vector<8x1xf32>
    %cst_68 = arith.constant 9.99999974E-6 : f32
    %127 = vector.broadcast %cst_68 : f32 to vector<8x1xf32>
    %128 = arith.addf %126, %127 : vector<8x1xf32>
    %129 = math.rsqrt %128 : vector<8x1xf32>
    %130 = vector.broadcast %122 : vector<8x1xf32> to vector<8x256xf32>
    %131 = arith.subf %111, %130 : vector<8x256xf32>
    %132 = vector.broadcast %129 : vector<8x1xf32> to vector<8x256xf32>
    %133 = arith.mulf %131, %132 : vector<8x256xf32>
    %134 = vector.broadcast %113 : vector<1x256xf32> to vector<8x256xf32>
    %135 = arith.mulf %133, %134 : vector<8x256xf32>
    %136 = vector.broadcast %115 : vector<1x256xf32> to vector<8x256xf32>
    %137 = arith.addf %135, %136 : vector<8x256xf32>
    %cst_69 = arith.constant 0.000000e+00 : f32
    %138 = vector.broadcast %cst_69 : f32 to vector<8x256xf32>
    %139 = arith.maximumf %137, %138 : vector<8x256xf32>
    %c1_70 = arith.constant 1 : index
    %c0_71 = arith.constant 0 : index
    %c0_72 = arith.constant 0 : index
    %140 = vector.load %arg11[%c1_70, %c0_71, %c0_72] : memref<2x1x256xf32, #tpu.memory_space<vmem>>, vector<1x1x256xf32>
    %141 = vector.shape_cast %140 : vector<1x1x256xf32> to vector<1x256xf32>
    %142 = vector.broadcast %141 : vector<1x256xf32> to vector<8x256xf32>
    %143 = arith.mulf %139, %142 : vector<8x256xf32>
    %cst_73 = arith.constant dense<0.000000e+00> : vector<8xf32>
    %144 = vector.multi_reduction <add>, %143, %cst_73 [1] : vector<8x256xf32> to vector<8xf32>
    %145 = vector.shape_cast %144 : vector<8xf32> to vector<8x1xf32>
    %146 = tpu.concatenate %77, %145 in 1 : vector<8x1xf32>, vector<8x1xf32> -> vector<8x2xf32>
    %c0_74 = arith.constant 0 : index
    %c0_75 = arith.constant 0 : index
    %147 = vector.load %arg12[%c0_74, %c0_75] : memref<1x2xf32, #tpu.memory_space<vmem>>, vector<1x2xf32>
    %148 = vector.broadcast %147 : vector<1x2xf32> to vector<8x2xf32>
    %149 = arith.addf %146, %148 : vector<8x2xf32>
    %c0_76 = arith.constant 0 : index
    %c0_77 = arith.constant 0 : index
    %150 = vector.load %arg13[%c0_76, %c0_77] : memref<8x2xf32, #tpu.memory_space<vmem>>, vector<8x2xf32>
    tpu.vector_store %arg13[%c0_76, %c0_77], %149 {strides = array<i32>} : memref<8x2xf32, #tpu.memory_space<vmem>>, vector<8x2xf32>,
    return
  }
}

</mosaic_0001>

<bundles_post_ra>
// kernel: tpu_custom_call.1
= control target key start
LH: loop header
LB: loop body
LE: loop exit
PB: predicated region body
PF: predicated region fallthrough
CT: control target
= control target key end

     0   :  { %18 = vsyncpa [#allocation3], 0  ;;  %s1426_s0 = inlined_call_operand.hbm [shape: f32[8,10], index: 0, kind: input, shape index: {}]   ;;  %s1427_s1 = inlined_call_operand.hbm [shape: f32[8,7], index: 1, kind: input, shape index: {}]   ;;  %s1428_s2 = inlined_call_operand.hbm [shape: f32[10,512], index: 2, kind: input, shape index: {}]   ;;  %s1429_s3 = inlined_call_operand.hbm [shape: f32[7,512], index: 3, kind: input, shape index: {}]   ;;  %s1430_s4 = inlined_call_operand.hbm [shape: f32[1,512], index: 4, kind: input, shape index: {}]   ;;  %s1431_s5 = inlined_call_operand.vmem [shape: f32[1,512], index: 5, kind: input, shape index: {}]   ;;  %s1432_s6 = inlined_call_operand.hbm [shape: f32[1,512], index: 6, kind: input, shape index: {}]   ;;  %s1433_s7 = inlined_call_operand.hbm [shape: f32[2,256,256], index: 7, kind: input, shape index: {}]   ;;  %s1434_s8 = inlined_call_operand.hbm [shape: f32[2,1,256], index: 8, kind: input, shape index: {}]   ;;  %s1435_s9 = inlined_call_operand.vmem [shape: f32[2,1,256], index: 9, kind: input, shape index: {}]   ;;  %s1436_s10 = inlined_call_operand.hbm [shape: f32[2,1,256], index: 10, kind: input, shape index: {}]   ;;  %s1437_s11 = inlined_call_operand.hbm [shape: f32[2,1,256], index: 11, kind: input, shape index: {}]   ;;  %s1438_s12 = inlined_call_operand.vmem [shape: f32[1,2], index: 12, kind: input, shape index: {}]   ;;  %s1439_s13 = inlined_call_operand.vmem [shape: f32[8,2], index: 13, kind: output, shape index: {}]  }
   0x1   :  { %19 = vsyncpa [#allocation5], 0 }
   0x2   :  { %20 = vsyncpa [#allocation8], 0 }
   0x3   :  { %21 = vsyncpa [#allocation11], 0 }
   0x4   :  { %22 = vsyncpa [#allocation14], 0  ;;  %s40_s27 = sshll.u32 %s1427_s1, 4  ;;  %s41_s27 = int_to_ptr.hbm [resolvable:$true] %s40_s27 }
   0x5   :  { %23 = vsyncpa [#allocation17], 0  ;;  %s1231_s28 = smov [#allocation4]   ;;  %s64_s15 = sshll.u32 %s1429_s3, 4  ;;  %s65_s15 = int_to_ptr.hbm [resolvable:$true] %s64_s15 }
   0x6   :  { %s42_s29 = sshll.u32 %s1231_s28, 4  ;;  %s1232_s16 = smov [#allocation7]   ;;  %s43_s29 = int_to_ptr.vmem [resolvable:$true] %s42_s29 }
   0x7   :  { %45 = dma.hbm_to_vmem [thread:$0]  %s41_s27, 128, %s43_s29, [#allocation5]  }
   0x8   :  { %s66_s17 = sshll.u32 %s1232_s16, 4  ;;  %s88_s20 = sshll.u32 %s1432_s6, 4  ;;  %s67_s17 = int_to_ptr.vmem [resolvable:$true] %s66_s17  ;;  %s89_s20 = int_to_ptr.hbm [resolvable:$true] %s88_s20 }
   0x9   :  { %69 = dma.hbm_to_vmem [thread:$0]  %s65_s15, 512, %s67_s17, [#allocation8]  }
   0xa   :  { %s1233_s1 = smov [#allocation10]   ;;  %s111_s24 = sshll.u32 %s1434_s8, 4  ;;  %s112_s24 = int_to_ptr.hbm [resolvable:$true] %s111_s24 }
   0xb   :  { %s90_s21 = sshll.u32 %s1233_s1, 4  ;;  %s1234_s3 = smov [#allocation13]   ;;  %s91_s21 = int_to_ptr.vmem [resolvable:$true] %s90_s21 }
   0xc   :  { %93 = dma.hbm_to_vmem [thread:$0]  %s89_s20, 64, %s91_s21, [#allocation11]  }
   0xd   :  { %s113_s25 = sshll.u32 %s1234_s3, 4  ;;  %s29_s28 = sshll.u32 %s1426_s0, 4  ;;  %s114_s25 = int_to_ptr.vmem [resolvable:$true] %s113_s25  ;;  %s30_s28 = int_to_ptr.hbm [resolvable:$true] %s29_s28 }
   0xe   :  { %s1235_s6 = smov 32   ;;  %s1236_s29 = smov 2  }
   0xf   :  { %119 = dma.hbm_to_vmem [thread:$0]  %s112_s24, 64, %s114_s25, [#allocation14], %s1235_s6, %s1235_s6, %s1236_s29  }
  0x10   :  { %s50_s8 = sshll.u32 %s1428_s2, 4  ;;  %s1237_s15 = smov [#allocation2]   ;;  %s51_s8 = int_to_ptr.hbm [resolvable:$true] %s50_s8 }
  0x11   :  { %s31_s16 = sshll.u32 %s1237_s15, 4  ;;  %s1238_s17 = smov [#allocation6]   ;;  %s32_s16 = int_to_ptr.vmem [resolvable:$true] %s31_s16 }
  0x12   :  { %34 = dma.hbm_to_vmem [thread:$0]  %s30_s28, 128, %s32_s16, [#allocation3]  }
  0x13   :  { %s52_s18 = sshll.u32 %s1238_s17, 4  ;;  %s75_s20 = sshll.u32 %s1430_s4, 4  ;;  %s53_s18 = int_to_ptr.vmem [resolvable:$true] %s52_s18  ;;  %s76_s20 = int_to_ptr.hbm [resolvable:$true] %s75_s20 }
  0x14   :  { %s1239_s1 = smov 512   ;;  %s1240_s21 = smov [#allocation9]  }
  0x15   :  { %58 = dma.hbm_to_vmem [thread:$0]  %s51_s8, 1024, %s53_s18, [#allocation5], %s1239_s1, %s1239_s1, %s1235_s6  }
  0x16   :  { %s77_s22 = sshll.u32 %s1240_s21, 4  ;;  %s98_s24 = sshll.u32 %s1433_s7, 4  ;;  %s78_s22 = int_to_ptr.vmem [resolvable:$true] %s77_s22  ;;  %s99_s24 = int_to_ptr.hbm [resolvable:$true] %s98_s24 }
  0x17   :  { %80 = dma.hbm_to_vmem [thread:$0]  %s76_s20, 64, %s78_s22, [#allocation8]  }
  0x18   :  { %s1241_s3 = smov [#allocation12]   ;;  %s126_s4 = sshll.u32 %s1436_s10, 4  ;;  %s127_s4 = int_to_ptr.hbm [resolvable:$true] %s126_s4 }
  0x19   :  { %s100_s25 = sshll.u32 %s1241_s3, 4  ;;  %s1242_s28 = smov 256   ;;  %s101_s25 = int_to_ptr.vmem [resolvable:$true] %s100_s25 }
  0x1a   :  { %s1243_s30 = smov 16   ;;  %s1244_s14 = smov [#allocation15]  }
  0x1b   :  { %106 = dma.hbm_to_vmem [thread:$0]  %s99_s24, 16384, %s101_s25, [#allocation11], %s1242_s28, %s1242_s28, %s1243_s30  }
  0x1c   :  { %s128_s8 = sshll.u32 %s1244_s14, 4  ;;  %s139_s7 = sshll.u32 %s1437_s11, 4  ;;  %s129_s8 = int_to_ptr.vmem [resolvable:$true] %s128_s8  ;;  %s140_s7 = int_to_ptr.hbm [resolvable:$true] %s139_s7 }
  0x1d   :  { %134 = dma.hbm_to_vmem [thread:$0]  %s127_s4, 64, %s129_s8, [#allocation14], %s1235_s6, %s1235_s6, %s1236_s29  }
  0x1e   :  { %s1245_s17 = smov [#allocation16]  }
  0x1f   :  { %s141_s18 = sshll.u32 %s1245_s17, 4  ;;  %s142_s18 = int_to_ptr.vmem [resolvable:$true] %s141_s18 }
  0x20   :  { %147 = dma.hbm_to_vmem [thread:$0]  %s140_s7, 64, %s142_s18, [#allocation17], %s1235_s6, %s1235_s6, %s1236_s29  }
  0x21   :  { %1219 = dma.done.wait [#allocation3], 128  }
  0x22   :  { %1220 = vsyncadd [#allocation3], 4294967168 }
  0x23   :  { %1221 = dma.done.wait [#allocation5], 1152  }
  0x24   :  { %1222 = vsyncadd [#allocation5], 4294966144 }
  0x25   :  { %1223 = dma.done.wait [#allocation8], 576  }
  0x26   :  { %1224 = vsyncadd [#allocation8], 4294966720 }
  0x27   :  { %1225 = dma.done.wait [#allocation11], 16448  }
  0x28   :  { %1226 = vsyncadd [#allocation11], 4294950848 }
  0x29   :  { %1227 = dma.done.wait [#allocation14], 128  }
  0x2a   :  { %1228 = vsyncadd [#allocation14], 4294967168 }
  0x2b   :  { %1229 = dma.done.wait [#allocation17], 64  }
  0x2c   :  { %1230 = vsyncadd [#allocation17], 4294967232  ;;  %vm208_vm0 = vcmask 1046528   ;;  %vm204_vm1 = vcmask 56320   ;;  %v200_v0 = vld [vmem:[#allocation7] sm:$0x7f] }
  0x2d   :  { %v201_v1 = vld [vmem:[#allocation7 + $0x8] sm:$0x7f]  ;;  %v202_v2 = vld [vmem:[#allocation7 + $0x10] sm:$0x7f]  ;;  %938 = vmatpush.msk.msra.mxu0 %vm208_vm0, %v200_v0  ;;  %v203_v3 = vld [vmem:[#allocation7 + $0x18] sm:$0x7f] }
  0x2e   :  { %940 = vmatpush.msk.msra.mxu1 %vm208_vm0, %v201_v1  ;;  %v191_v4 = vld [vmem:[#allocation4] sm:$0xff]  ;;  %942 = vmatpush.msk.msra.mxu2 %vm208_vm0, %v202_v2  ;;  %v196_v5 = vld [vmem:[#allocation6 + $0x20] sm:$0x3]  ;;  %vm305_vm2 = vcmask 1041408   ;;  %v197_v6 = vld [vmem:[#allocation6 + $0x28] sm:$0x3] }
  0x2f   :  { %944 = vmatpush.msk.msra.mxu3 %vm208_vm0, %v203_v3  ;;  %939 = vmatmul.msk.f32.vlgmr.msra.gmra.mxu0 %vm204_vm1, %v191_v4  ;;  %v198_v7 = vld [vmem:[#allocation6 + $0x30] sm:$0x3]  ;;  %v199_v8 = vld [vmem:[#allocation6 + $0x38] sm:$0x3]  ;;  %v192_v9 = vld [vmem:[#allocation6] sm:$0xff]  ;;  %vm301_vm3 = vcmask 80896  }
  0x30   :  { %941 = vmatmul.msk.f32.vlgmr.msra.gmra.mxu1 %vm204_vm1, %v191_v4  ;;  %943 = vmatmul.msk.f32.vlgmr.msra.gmra.mxu2 %vm204_vm1, %v191_v4  ;;  %v193_v10 = vld [vmem:[#allocation6 + $0x8] sm:$0xff]  ;;  %v194_v11 = vld [vmem:[#allocation6 + $0x10] sm:$0xff]  ;;  %v195_v12 = vld [vmem:[#allocation6 + $0x18] sm:$0xff]  ;;  %vm919_vm0 = vcmask 7168  }
  0x31   :  { %945 = vmatmul.msk.f32.vlgmr.msra.gmra.mxu3 %vm204_vm1, %v191_v4  ;;  %946 = vmatpush.msk.msrb.mxu0 %vm305_vm2, %v196_v5  ;;  %v190_v13 = vld [vmem:[#allocation2] sm:$0xff]  ;;  %v487_v14 = vld [vmem:[#allocation12 + $0xf0] sm:$0xff]  ;;  %v488_v16 = vld [vmem:[#allocation12 + $0xf8] sm:$0xff]  ;;  %vm926_vm1 = vcmask 15360  }
  0x32   :  { %948 = vmatpush.msk.msrb.mxu1 %vm305_vm2, %v197_v6  ;;  %950 = vmatpush.msk.msrb.mxu2 %vm305_vm2, %v198_v7  ;;  %v519_v15 = vld [vmem:[#allocation12 + $0x1f0] sm:$0xff]  ;;  %v520_v17 = vld [vmem:[#allocation12 + $0x1f8] sm:$0xff]  ;;  %v485_v18 = vld [vmem:[#allocation12 + $0xe0] sm:$0xff] }
  0x33   :  { %952 = vmatpush.msk.msrb.mxu3 %vm305_vm2, %v199_v8  ;;  %333 = vmatpush.msrb.mxu0 %v192_v9  ;;  %v517_v19 = vld [vmem:[#allocation12 + $0x1e0] sm:$0xff]  ;;  %v486_v22 = vld [vmem:[#allocation12 + $0xe8] sm:$0xff]  ;;  %v483_v24 = vld [vmem:[#allocation12 + $0xd0] sm:$0xff] }
  0x34   :  { %353 = vmatpush.msrb.mxu1 %v193_v10  ;;  %373 = vmatpush.msrb.mxu2 %v194_v11  ;;  %v518_v23 = vld [vmem:[#allocation12 + $0x1e8] sm:$0xff]  ;;  %v515_v25 = vld [vmem:[#allocation12 + $0x1d0] sm:$0xff]  ;;  %v484_v26 = vld [vmem:[#allocation12 + $0xd8] sm:$0xff] }
  0x35   :  { %393 = vmatpush.msrb.mxu3 %v195_v12  ;;  %527 = vmatpush.msra.mxu0 %v487_v14  ;;  %v516_v27 = vld [vmem:[#allocation12 + $0x1d8] sm:$0xff]  ;;  %v481_v28 = vld [vmem:[#allocation12 + $0xc0] sm:$0xff]  ;;  %v482_v30 = vld [vmem:[#allocation12 + $0xc8] sm:$0xff] }
  0x36   :  { %547 = vmatpush.msra.mxu1 %v519_v15  ;;  %567 = vmatpush.msra.mxu2 %v488_v16  ;;  %v513_v29 = vld [vmem:[#allocation12 + $0x1c0] sm:$0xff]  ;;  %v514_v31 = vld [vmem:[#allocation12 + $0x1c8] sm:$0xff]  ;;  %v398_v32 = vld [vmem:[#allocation9] sm:$0xf] }
  0x37   :  { %947 = vmatmul.msk.f32.vlgmr.msrb.gmra.mxu0 %vm301_vm3, %v190_v13  ;;  %587 = vmatpush.msra.mxu3 %v520_v17  ;;  %v479_v33 = vld [vmem:[#allocation12 + $0xb0] sm:$0xff]  ;;  %v480_v35 = vld [vmem:[#allocation12 + $0xb8] sm:$0xff]  ;;  %v477_v37 = vld [vmem:[#allocation12 + $0xa0] sm:$0xff]  ;;  %v400_v41 = vperm.slane %v398_v32, 0  ;;  %v401_v42 = vperm.slane %v398_v32, 1  ;;  %v402_v56 = vperm.slane %v398_v32, 2 }
  0x38   :  { %949 = vmatmul.msk.f32.vlgmr.msrb.gmra.mxu1 %vm301_vm3, %v190_v13  ;;  %951 = vmatmul.msk.f32.vlgmr.msrb.gmra.mxu2 %vm301_vm3, %v190_v13  ;;  %v511_v34 = vld [vmem:[#allocation12 + $0x1b0] sm:$0xff]  ;;  %v512_v36 = vld [vmem:[#allocation12 + $0x1b8] sm:$0xff]  ;;  %v509_v38 = vld [vmem:[#allocation12 + $0x1a0] sm:$0xff]  ;;  %v403_v57 = vperm.slane %v398_v32, 3 }
  0x39   :  { %953 = vmatmul.msk.f32.vlgmr.msrb.gmra.mxu3 %vm301_vm3, %v190_v13  ;;  %528 = vmatpush.msra.mxu0 %v485_v18  ;;  %v478_v43 = vld [vmem:[#allocation12 + $0xa8] sm:$0xff]  ;;  %v475_v47 = vld [vmem:[#allocation12 + $0x90] sm:$0xff]  ;;  %v476_v51 = vld [vmem:[#allocation12 + $0x98] sm:$0xff] }
  0x3a   :  { %548 = vmatpush.msra.mxu1 %v517_v19  ;;  %568 = vmatpush.msra.mxu2 %v486_v22  ;;  %v510_v44 = vld [vmem:[#allocation12 + $0x1a8] sm:$0xff]  ;;  %v507_v48 = vld [vmem:[#allocation12 + $0x190] sm:$0xff]  ;;  %v508_v52 = vld [vmem:[#allocation12 + $0x198] sm:$0xff] }
  0x3b   :  { %588 = vmatpush.msra.mxu3 %v518_v23  ;;  %529 = vmatpush.msra.mxu0 %v483_v24  ;;  %v473_v7 = vld [vmem:[#allocation12 + $0x80] sm:$0xff]  ;;  %v474_v9 = vld [vmem:[#allocation12 + $0x88] sm:$0xff]  ;;  %v471_v11 = vld [vmem:[#allocation12 + $0x70] sm:$0xff] }
  0x3c   :  { %549 = vmatpush.msra.mxu1 %v515_v25  ;;  %569 = vmatpush.msra.mxu2 %v484_v26  ;;  %v505_v8 = vld [vmem:[#allocation12 + $0x180] sm:$0xff]  ;;  %v506_v10 = vld [vmem:[#allocation12 + $0x188] sm:$0xff]  ;;  %v503_v12 = vld [vmem:[#allocation12 + $0x170] sm:$0xff] }
  0x3d   :  { %589 = vmatpush.msra.mxu3 %v516_v27  ;;  %530 = vmatpush.msra.mxu0 %v481_v28  ;;  %v472_v13 = vld [vmem:[#allocation12 + $0x78] sm:$0xff]  ;;  %v469_v15 = vld [vmem:[#allocation12 + $0x60] sm:$0xff]  ;;  %v470_v17 = vld [vmem:[#allocation12 + $0x68] sm:$0xff] }
  0x3e   :  { %550 = vmatpush.msra.mxu1 %v513_v29  ;;  %570 = vmatpush.msra.mxu2 %v482_v30  ;;  %v504_v14 = vld [vmem:[#allocation12 + $0x178] sm:$0xff]  ;;  %v501_v16 = vld [vmem:[#allocation12 + $0x160] sm:$0xff]  ;;  %v502_v18 = vld [vmem:[#allocation12 + $0x168] sm:$0xff] }
  0x3f   :  { %590 = vmatpush.msra.mxu3 %v514_v31  ;;  %531 = vmatpush.msra.mxu0 %v479_v33  ;;  %v467_v19 = vld [vmem:[#allocation12 + $0x50] sm:$0xff]  ;;  %v500_v22 = vld [vmem:[#allocation12 + $0x158] sm:$0xff]  ;;  %v465_v23 = vld [vmem:[#allocation12 + $0x40] sm:$0xff] }
  0x40   :  { %551 = vmatpush.msra.mxu1 %v511_v34  ;;  %571 = vmatpush.msra.mxu2 %v480_v35  ;;  %v497_v24 = vld [vmem:[#allocation12 + $0x140] sm:$0xff]  ;;  %v466_v25 = vld [vmem:[#allocation12 + $0x48] sm:$0xff]  ;;  %v463_v27 = vld [vmem:[#allocation12 + $0x30] sm:$0xff] }
  0x41   :  { %591 = vmatpush.msra.mxu3 %v512_v36  ;;  %532 = vmatpush.msra.mxu0 %v477_v37  ;;  %v498_v26 = vld [vmem:[#allocation12 + $0x148] sm:$0xff]  ;;  %v495_v28 = vld [vmem:[#allocation12 + $0x130] sm:$0xff]  ;;  %v464_v29 = vld [vmem:[#allocation12 + $0x38] sm:$0xff] }
  0x42   :  { %552 = vmatpush.msra.mxu1 %v509_v38  ;;  %572 = vmatpush.msra.mxu2 %v478_v43  ;;  %v496_v30 = vld [vmem:[#allocation12 + $0x138] sm:$0xff]  ;;  %v461_v31 = vld [vmem:[#allocation12 + $0x20] sm:$0xff]  ;;  %v462_v33 = vld [vmem:[#allocation12 + $0x28] sm:$0xff] }
  0x43   :  { %592 = vmatpush.msra.mxu3 %v510_v44  ;;  %533 = vmatpush.msra.mxu0 %v475_v47  ;;  %v493_v32 = vld [vmem:[#allocation12 + $0x120] sm:$0xff]  ;;  %v494_v34 = vld [vmem:[#allocation12 + $0x128] sm:$0xff]  ;;  %v459_v35 = vld [vmem:[#allocation12 + $0x10] sm:$0xff] }
  0x44   :  { %553 = vmatpush.msra.mxu1 %v507_v48  ;;  %573 = vmatpush.msra.mxu2 %v476_v51  ;;  %v491_v36 = vld [vmem:[#allocation12 + $0x110] sm:$0xff]  ;;  %v460_v37 = vld [vmem:[#allocation12 + $0x18] sm:$0xff]  ;;  %v737_v47 = vld [vmem:[#allocation12 + $0x2e0] sm:$0xff] }
  0x45   :  { %593 = vmatpush.msra.mxu3 %v508_v52  ;;  %534 = vmatpush.msra.mxu0 %v473_v7  ;;  %v492_v38 = vld [vmem:[#allocation12 + $0x118] sm:$0xff]  ;;  %v739_v43 = vld [vmem:[#allocation12 + $0x2f0] sm:$0xff]  ;;  %v769_v48 = vld [vmem:[#allocation12 + $0x3e0] sm:$0xff] }
  0x46   :  { %554 = vmatpush.msra.mxu1 %v505_v8  ;;  %574 = vmatpush.msra.mxu2 %v474_v9  ;;  %v771_v44 = vld [vmem:[#allocation12 + $0x3f0] sm:$0xff]  ;;  %v728_v9 = vld [vmem:[#allocation12 + $0x298] sm:$0xff] }
  0x47   :  { %594 = vmatpush.msra.mxu3 %v506_v10  ;;  %535 = vmatpush.msra.mxu0 %v471_v11  ;;  %v735_v51 = vld [vmem:[#allocation12 + $0x2d0] sm:$0xff]  ;;  %v760_v10 = vld [vmem:[#allocation12 + $0x398] sm:$0xff] }
  0x48   :  { %555 = vmatpush.msra.mxu1 %v503_v12  ;;  %575 = vmatpush.msra.mxu2 %v472_v13  ;;  %v767_v52 = vld [vmem:[#allocation12 + $0x3d0] sm:$0xff]  ;;  %v725_v12 = vld [vmem:[#allocation12 + $0x280] sm:$0xff] }
  0x49   :  { %595 = vmatpush.msra.mxu3 %v504_v14  ;;  %536 = vmatpush.msra.mxu0 %v469_v15  ;;  %v727_v7 = vld [vmem:[#allocation12 + $0x290] sm:$0xff]  ;;  %v757_v13 = vld [vmem:[#allocation12 + $0x380] sm:$0xff]  ;;  %v726_v14 = vld [vmem:[#allocation12 + $0x288] sm:$0xff] }
  0x4a   :  { %556 = vmatpush.msra.mxu1 %v501_v16  ;;  %576 = vmatpush.msra.mxu2 %v470_v17  ;;  %v759_v8 = vld [vmem:[#allocation12 + $0x390] sm:$0xff]  ;;  %v758_v15 = vld [vmem:[#allocation12 + $0x388] sm:$0xff] }
  0x4b   :  { %596 = vmatpush.msra.mxu3 %v502_v18  ;;  %537 = vmatpush.msra.mxu0 %v467_v19  ;;  %v723_v16 = vld [vmem:[#allocation12 + $0x270] sm:$0xff]  ;;  %v724_v18 = vld [vmem:[#allocation12 + $0x278] sm:$0xff] }
  0x4c   :  { %v755_v17 = vld [vmem:[#allocation12 + $0x370] sm:$0xff]  ;;  %v756_v19 = vld [vmem:[#allocation12 + $0x378] sm:$0xff] }
  0x4d   :  { %597 = vmatpush.msra.mxu3 %v500_v22  ;;  %538 = vmatpush.msra.mxu0 %v465_v23  ;;  %v722_v22 = vld [vmem:[#allocation12 + $0x268] sm:$0xff] }
  0x4f   :  { %598 = vmatpush.msra.mxu3 %v498_v26  ;;  %539 = vmatpush.msra.mxu0 %v463_v27  ;;  %v751_v26 = vld [vmem:[#allocation12 + $0x350] sm:$0xff]  ;;  %v720_v27 = vld [vmem:[#allocation12 + $0x258] sm:$0xff] }
  0x51   :  { %599 = vmatpush.msra.mxu3 %v496_v30  ;;  %540 = vmatpush.msra.mxu0 %v461_v31  ;;  %v717_v31 = vld [vmem:[#allocation12 + $0x240] sm:$0xff] }
  0x53   :  { %600 = vmatpush.msra.mxu3 %v494_v34  ;;  %541 = vmatpush.msra.mxu0 %v459_v35 }
  0x55   :  { %601 = vmatpush.msra.mxu3 %v492_v38  ;;  %v747_v38 = vld [vmem:[#allocation12 + $0x330] sm:$0xff] }
  0xac   :  { %v238_v20 = vpop.f32.mrf.mxu0 }
  0xad   :  { %v258_v21 = vpop.f32.mrf.mxu1 }
  0xb3   :  { %v278_v39 = vpop.f32.mrf.mxu2 }
  0xb4   :  { %v298_v40 = vpop.f32.mrf.mxu3  ;;  %v335_v45 = vpop.f32.mrf.mxu0 }
  0xb5   :  { %v355_v46 = vpop.f32.mrf.mxu1  ;;  %v336_v49 = vadd.f32 %v335_v45, %v238_v20  ;;  %v499_v20 = vld [vmem:[#allocation12 + $0x150] sm:$0xff]  ;;  %v740_v45 = vld [vmem:[#allocation12 + $0x2f8] sm:$0xff] }
  0xb6   :  { %v356_v50 = vadd.f32 %v355_v46, %v258_v21  ;;  %v468_v21 = vld [vmem:[#allocation12 + $0x58] sm:$0xff]  ;;  %557 = vmatpush.msra.mxu1 %v499_v20  ;;  %v721_v20 = vld [vmem:[#allocation12 + $0x260] sm:$0xff] }
  0xb7   :  { %v1360_v53 = vadd.f32 %v400_v41, %v336_v49  ;;  %577 = vmatpush.msra.mxu2 %v468_v21  ;;  %v458_v41 = vld [vmem:[#allocation12 + $0x8] sm:$0xff]  ;;  %v772_v46 = vld [vmem:[#allocation12 + $0x3f8] sm:$0xff]  ;;  %v753_v21 = vld [vmem:[#allocation12 + $0x360] sm:$0xff] }
  0xb8   :  { %v1362_v54 = vadd.f32 %v401_v42, %v356_v50  ;;  %558 = vmatpush.msra.mxu1 %v497_v24  ;;  %v490_v42 = vld [vmem:[#allocation12 + $0x108] sm:$0xff] }
  0xb9   :  { %v417_v62 = vmul.f32 %v1360_v53, %v1360_v53  ;;  %578 = vmatpush.msra.mxu2 %v466_v25  ;;  %602 = vmatpush.msra.mxu3 %v490_v42  ;;  %v738_v49 = vld [vmem:[#allocation12 + $0x2e8] sm:$0xff]  ;;  %v719_v25 = vld [vmem:[#allocation12 + $0x250] sm:$0xff]  ;;  %v713_v42 = vld [vmem:[#allocation12 + $0x220] sm:$0xff] }
  0xba   :  { %v414_v55 = vadd.f32 %v1362_v54, %v1360_v53  ;;  %v418_v63 = vmul.f32 %v1362_v54, %v1362_v54  ;;  %559 = vmatpush.msra.mxu1 %v495_v28  ;;  %v770_v50 = vld [vmem:[#allocation12 + $0x3e8] sm:$0xff] }
  0xbb   :  { %v375_v58 = vpop.f32.mrf.mxu2  ;;  %579 = vmatpush.msra.mxu2 %v464_v29  ;;  %840 = vmatpush.msrb.mxu3 %v772_v46  ;;  %v754_v24 = vld [vmem:[#allocation12 + $0x368] sm:$0xff]  ;;  %v752_v29 = vld [vmem:[#allocation12 + $0x358] sm:$0xff] }
  0xbc   :  { %v395_v59 = vpop.f32.mrf.mxu3  ;;  %415 = vadd.xlane.f32.xlu0 %v414_v55  ;;  %v376_v60 = vadd.f32 %v375_v58, %v278_v39  ;;  %v419_v3 = vadd.f32 %v418_v63, %v417_v62  ;;  %560 = vmatpush.msra.mxu1 %v493_v32  ;;  %v457_v39 = vld [vmem:[#allocation12] sm:$0xff]  ;;  %v736_v55 = vld [vmem:[#allocation12 + $0x2d8] sm:$0xff]  ;;  %v763_v62 = vld [vmem:[#allocation12 + $0x3b0] sm:$0xff] }
  0xbd   :  { %v396_v61 = vadd.f32 %v395_v59, %v298_v40  ;;  %580 = vmatpush.msra.mxu2 %v462_v33  ;;  %v489_v40 = vld [vmem:[#allocation12 + $0x100] sm:$0xff]  ;;  %542 = vmatpush.msra.mxu0 %v457_v39  ;;  %v734_v59 = vld [vmem:[#allocation12 + $0x2c8] sm:$0xff]  ;;  %v732_v63 = vld [vmem:[#allocation12 + $0x2b8] sm:$0xff] }
  0xbe   :  { %v1370_v0 = vadd.f32 %v402_v56, %v376_v60  ;;  %561 = vmatpush.msra.mxu1 %v491_v36  ;;  %841 = vmatpush.msrb.mxu3 %v770_v50  ;;  %v768_v56 = vld [vmem:[#allocation12 + $0x3d8] sm:$0xff]  ;;  %v765_v58 = vld [vmem:[#allocation12 + $0x3c0] sm:$0xff]  ;;  %v766_v60 = vld [vmem:[#allocation12 + $0x3c8] sm:$0xff] }
  0xbf   :  { %v1372_v1 = vadd.f32 %v403_v57, %v396_v61  ;;  %581 = vmatpush.msra.mxu2 %v460_v37  ;;  %780 = vmatpush.msrb.mxu0 %v739_v43  ;;  %v733_v57 = vld [vmem:[#allocation12 + $0x2c0] sm:$0xff]  ;;  %v731_v61 = vld [vmem:[#allocation12 + $0x2b0] sm:$0xff]  ;;  %v718_v33 = vld [vmem:[#allocation12 + $0x248] sm:$0xff] }
  0xc0   :  { %v668_v4 = vmul.f32 %v1370_v0, %v1370_v0  ;;  %562 = vmatpush.msra.mxu1 %v489_v40  ;;  %842 = vmatpush.msrb.mxu3 %v768_v56  ;;  %v749_v32 = vld [vmem:[#allocation12 + $0x340] sm:$0xff]  ;;  %v750_v36 = vld [vmem:[#allocation12 + $0x348] sm:$0xff]  ;;  %v715_v37 = vld [vmem:[#allocation12 + $0x230] sm:$0xff] }
  0xc1   :  { %v665_v2 = vadd.f32 %v1372_v1, %v1370_v0  ;;  %v669_v5 = vmul.f32 %v1372_v1, %v1372_v1  ;;  %582 = vmatpush.msra.mxu2 %v458_v41  ;;  %781 = vmatpush.msrb.mxu0 %v737_v47  ;;  %v716_v39 = vld [vmem:[#allocation12 + $0x238] sm:$0xff]  ;;  %v745_v43 = vld [vmem:[#allocation12 + $0x320] sm:$0xff]  ;;  %v746_v46 = vld [vmem:[#allocation12 + $0x328] sm:$0xff] }
  0xc2   :  { %800 = vmatpush.msrb.mxu1 %v771_v44  ;;  %843 = vmatpush.msrb.mxu3 %v766_v60  ;;  %v748_v41 = vld [vmem:[#allocation12 + $0x338] sm:$0xff]  ;;  %v741_v56 = vld [vmem:[#allocation12 + $0x300] sm:$0xff]  ;;  %v742_v60 = vld [vmem:[#allocation12 + $0x308] sm:$0xff] }
  0xc3   :  { %666 = vadd.xlane.f32.xlu1 %v665_v2  ;;  %v670_v6 = vadd.f32 %v669_v5, %v668_v4  ;;  %820 = vmatpush.msrb.mxu2 %v740_v45  ;;  %v764_v2 = vld [vmem:[#allocation12 + $0x3b8] sm:$0xff]  ;;  %v761_v4 = vld [vmem:[#allocation12 + $0x3a0] sm:$0xff]  ;;  %v730_v5 = vld [vmem:[#allocation12 + $0x2a8] sm:$0xff] }
  0xc4   :  { %420 = vadd.xlane.f32.xlu0 %v419_v3  ;;  %801 = vmatpush.msrb.mxu1 %v769_v48  ;;  %v729_v3 = vld [vmem:[#allocation12 + $0x2a0] sm:$0xff]  ;;  %v714_v45 = vld [vmem:[#allocation12 + $0x228] sm:$0xff]  ;;  %v711_v48 = vld [vmem:[#allocation12 + $0x210] sm:$0xff] }
  0xc5   :  { %821 = vmatpush.msrb.mxu2 %v738_v49  ;;  %782 = vmatpush.msrb.mxu0 %v735_v51  ;;  %v743_v49 = vld [vmem:[#allocation12 + $0x310] sm:$0xff]  ;;  %v712_v50 = vld [vmem:[#allocation12 + $0x218] sm:$0xff] }
  0xc6   :  { %802 = vmatpush.msrb.mxu1 %v767_v52  ;;  %844 = vmatpush.msrb.mxu3 %v764_v2  ;;  %v744_v51 = vld [vmem:[#allocation12 + $0x318] sm:$0xff] }
  0xc7   :  { %822 = vmatpush.msrb.mxu2 %v736_v55  ;;  %783 = vmatpush.msrb.mxu0 %v733_v57  ;;  %v709_v55 = vld [vmem:[#allocation12 + $0x200] sm:$0xff] }
  0xc8   :  { %803 = vmatpush.msrb.mxu1 %v765_v58 }
  0xc9   :  { %823 = vmatpush.msrb.mxu2 %v734_v59  ;;  %784 = vmatpush.msrb.mxu0 %v731_v61  ;;  %v710_v59 = vld [vmem:[#allocation12 + $0x208] sm:$0xff] }
  0xca   :  { %804 = vmatpush.msrb.mxu1 %v763_v62 }
  0xcb   :  { %671 = vadd.xlane.f32.xlu1 %v670_v6  ;;  %824 = vmatpush.msrb.mxu2 %v732_v63  ;;  %v762_v6 = vld [vmem:[#allocation12 + $0x3a8] sm:$0xff] }
  0xcc   :  { %785 = vmatpush.msrb.mxu0 %v729_v3  ;;  %805 = vmatpush.msrb.mxu1 %v761_v4 }
  0xcd   :  { %825 = vmatpush.msrb.mxu2 %v730_v5  ;;  %845 = vmatpush.msrb.mxu3 %v762_v6  ;;  %v412_v5 = vld [vmem:[%s1431_s5] sm:$0x3] }
  0xce   :  { %786 = vmatpush.msrb.mxu0 %v727_v7  ;;  %806 = vmatpush.msrb.mxu1 %v759_v8 }
  0xcf   :  { %826 = vmatpush.msrb.mxu2 %v728_v9  ;;  %846 = vmatpush.msrb.mxu3 %v760_v10  ;;  %v413_v9 = vld [vmem:[#allocation10] sm:$0x3] }
  0xd0   :  { %787 = vmatpush.msrb.mxu0 %v725_v12  ;;  %807 = vmatpush.msrb.mxu1 %v757_v13 }
  0xd1   :  { %827 = vmatpush.msrb.mxu2 %v726_v14  ;;  %847 = vmatpush.msrb.mxu3 %v758_v15  ;;  %v443_v15 = vperm.slane %v412_v5, 1 }
  0xd2   :  { %788 = vmatpush.msrb.mxu0 %v723_v16  ;;  %808 = vmatpush.msrb.mxu1 %v755_v17  ;;  %v449_v17 = vperm.slane %v413_v9, 0 }
  0xd3   :  { %828 = vmatpush.msrb.mxu2 %v724_v18  ;;  %848 = vmatpush.msrb.mxu3 %v756_v19 }
  0xd4   :  { %789 = vmatpush.msrb.mxu0 %v721_v20  ;;  %809 = vmatpush.msrb.mxu1 %v753_v21  ;;  %v450_v21 = vperm.slane %v413_v9, 1 }
  0xd5   :  { %829 = vmatpush.msrb.mxu2 %v722_v22  ;;  %849 = vmatpush.msrb.mxu3 %v754_v24 }
  0xd6   :  { %790 = vmatpush.msrb.mxu0 %v719_v25  ;;  %810 = vmatpush.msrb.mxu1 %v751_v26 }
  0xd7   :  { %830 = vmatpush.msrb.mxu2 %v720_v27  ;;  %850 = vmatpush.msrb.mxu3 %v752_v29  ;;  %v664_v27 = vld [vmem:[#allocation10 + $0x2] sm:$0x3] }
  0xd8   :  { %791 = vmatpush.msrb.mxu0 %v717_v31  ;;  %811 = vmatpush.msrb.mxu1 %v749_v32 }
  0xd9   :  { %831 = vmatpush.msrb.mxu2 %v718_v33  ;;  %851 = vmatpush.msrb.mxu3 %v750_v36 }
  0xda   :  { %792 = vmatpush.msrb.mxu0 %v715_v37  ;;  %812 = vmatpush.msrb.mxu1 %v747_v38  ;;  %v700_v37 = vperm.slane %v664_v27, 0  ;;  %v701_v38 = vperm.slane %v664_v27, 1 }
  0xdb   :  { %832 = vmatpush.msrb.mxu2 %v716_v39  ;;  %852 = vmatpush.msrb.mxu3 %v748_v41 }
  0xdc   :  { %793 = vmatpush.msrb.mxu0 %v713_v42  ;;  %813 = vmatpush.msrb.mxu1 %v745_v43  ;;  %v521_v43 = vld [vmem:[#allocation13] sm:$0x3] }
  0xdd   :  { %833 = vmatpush.msrb.mxu2 %v714_v45  ;;  %853 = vmatpush.msrb.mxu3 %v746_v46 }
  0xde   :  { %794 = vmatpush.msrb.mxu0 %v711_v48  ;;  %814 = vmatpush.msrb.mxu1 %v743_v49  ;;  %v774_v49 = vld [vmem:[#allocation13 + $0x2] sm:$0x3] }
  0xdf   :  { %834 = vmatpush.msrb.mxu2 %v712_v50  ;;  %854 = vmatpush.msrb.mxu3 %v744_v51 }
  0xe0   :  { %795 = vmatpush.msrb.mxu0 %v709_v55  ;;  %815 = vmatpush.msrb.mxu1 %v741_v56  ;;  %v776_v56 = vperm.slane %v774_v49, 0 }
  0xe1   :  { %835 = vmatpush.msrb.mxu2 %v710_v59  ;;  %855 = vmatpush.msrb.mxu3 %v742_v60  ;;  %v777_v59 = vperm.slane %v774_v49, 1 }
 0x12f   :  { %v416_v11 = vpop.xlane.xlu0 %415 }
 0x130   :  { %v1380_v23 = vmul.f32 0.00390625, %v416_v11  ;;  %v442_v11 = vperm.slane %v412_v5, 0 }
 0x132   :  { %v424_v34 = vmul.f32 %v1380_v23, %v1380_v23  ;;  %v437_v12 = vsub.f32 %v1360_v53, %v1380_v23  ;;  %v438_v13 = vsub.f32 %v1362_v54, %v1380_v23  ;;  %v663_v53 = vld [vmem:[%s1431_s5 + $0x2] sm:$0x3] }
 0x133   :  { %v694_v31 = vperm.slane %v663_v53, 1 }
 0x136   :  { %v667_v28 = vpop.xlane.xlu1 %666 }
 0x137   :  { %v421_v30 = vpop.xlane.xlu0 %420  ;;  %v1384_v44 = vmul.f32 0.00390625, %v667_v28 }
 0x138   :  { %v423_v35 = vmul.f32 0.00390625, %v421_v30  ;;  %v693_v30 = vperm.slane %v663_v53, 0 }
 0x139   :  { %v675_v57 = vmul.f32 %v1384_v44, %v1384_v44  ;;  %v688_v28 = vsub.f32 %v1370_v0, %v1384_v44  ;;  %v689_v29 = vsub.f32 %v1372_v1, %v1384_v44  ;;  %v523_v44 = vperm.slane %v521_v43, 0 }
 0x13a   :  { %v425_v40 = vsub.f32 %v423_v35, %v424_v34 }
 0x13c   :  { %v426_v47 = vadd.f32 1e-05, %v425_v40 }
 0x13e   :  { %971 = vrsqrt.f32 %v426_v47  ;;  %v672_v52 = vpop.xlane.xlu1 %671  ;;  %vm433_vm5 = vweird.f32 %v426_v47 }
 0x13f   :  { %v674_v58 = vmul.f32 0.00390625, %v672_v52 }
 0x141   :  { %v676_v61 = vsub.f32 %v674_v58, %v675_v57 }
 0x143   :  { %v677_v62 = vadd.f32 1e-05, %v676_v61 }
 0x144   :  { %v972_v63 = vpop.eup %971 }
 0x145   :  { %v428_v2 = vmul.f32 %v972_v63, %v426_v47  ;;  %973 = vrsqrt.f32 %v677_v62  ;;  %vm434_vm4 = vweird.f32 %v972_v63  ;;  %vm684_vm8 = vweird.f32 %v677_v62 }
 0x146   :  { %vm435_vm6 = vmor %vm433_vm5, %vm434_vm4  ;;  %v524_v47 = vperm.slane %v521_v43, 1 }
 0x147   :  { %v429_v3 = vmul.f32 %v972_v63, %v428_v2 }
 0x149   :  { %v430_v4 = vmul.f32 0.5, %v429_v3 }
 0x14b   :  { %v974_v6 = vpop.eup %973  ;;  %v431_v7 = vsub.f32 1.5, %v430_v4 }
 0x14c   :  { %v679_v8 = vmul.f32 %v974_v6, %v677_v62  ;;  %vm685_vm7 = vweird.f32 %v974_v6 }
 0x14d   :  { %v432_v10 = vmul.f32 %v972_v63, %v431_v7  ;;  %vm686_vm9 = vmor %vm684_vm8, %vm685_vm7 }
 0x14e   :  { %v680_v14 = vmul.f32 %v974_v6, %v679_v8 }
 0x14f   :  { %v436_v16 = vsel %vm435_vm6, %v972_v63, %v432_v10 }
 0x150   :  { %v439_v18 = vmul.f32 %v437_v12, %v436_v16  ;;  %v440_v19 = vmul.f32 %v438_v13, %v436_v16  ;;  %v681_v20 = vmul.f32 0.5, %v680_v14 }
 0x152   :  { %v682_v22 = vsub.f32 1.5, %v681_v20  ;;  %v446_v24 = vmul.f32 %v442_v11, %v439_v18  ;;  %v447_v25 = vmul.f32 %v443_v15, %v440_v19 }
 0x154   :  { %v683_v26 = vmul.f32 %v974_v6, %v682_v22  ;;  %v453_v54 = vadd.f32 %v449_v17, %v446_v24  ;;  %v454_v23 = vadd.f32 %v450_v21, %v447_v25 }
 0x156   :  { %v687_v32 = vsel %vm686_vm9, %v974_v6, %v683_v26  ;;  %v455_v33 = vmax.f32 %v453_v54, 0.0  ;;  %v456_v34 = vmax.f32 %v454_v23, 0.0 }
 0x157   :  { %v690_v35 = vmul.f32 %v688_v28, %v687_v32  ;;  %v691_v36 = vmul.f32 %v689_v29, %v687_v32 }
 0x158   :  { %543 = vmatmul.f32.vlgmr.msra.gmra.mxu0 %v455_v33  ;;  %563 = vmatmul.f32.vlgmr.msra.gmra.mxu1 %v456_v34 }
 0x159   :  { %583 = vmatmul.f32.vlgmr.msra.gmra.mxu2 %v455_v33  ;;  %603 = vmatmul.f32.vlgmr.msra.gmra.mxu3 %v456_v34  ;;  %v697_v39 = vmul.f32 %v693_v30, %v690_v35  ;;  %v698_v40 = vmul.f32 %v694_v31, %v691_v36  ;;  %v607_v30 = vld [vmem:[%s1435_s9] sm:$0x3]  ;;  %v608_v34 = vld [vmem:[#allocation15] sm:$0x3] }
 0x15b   :  { %v704_v0 = vadd.f32 %v700_v37, %v697_v39  ;;  %v705_v41 = vadd.f32 %v701_v38, %v698_v40  ;;  %v637_v37 = vperm.slane %v607_v30, 0  ;;  %v638_v38 = vperm.slane %v607_v30, 1 }
 0x15d   :  { %v706_v42 = vmax.f32 %v704_v0, 0.0  ;;  %v707_v1 = vmax.f32 %v705_v41, 0.0 }
 0x160   :  { %796 = vmatmul.f32.vlgmr.msrb.gmra.mxu0 %v706_v42  ;;  %816 = vmatmul.f32.vlgmr.msrb.gmra.mxu1 %v707_v1 }
 0x161   :  { %836 = vmatmul.f32.vlgmr.msrb.gmra.mxu2 %v706_v42  ;;  %856 = vmatmul.f32.vlgmr.msrb.gmra.mxu3 %v707_v1  ;;  %v644_v42 = vperm.slane %v608_v34, 0  ;;  %v645_v1 = vperm.slane %v608_v34, 1 }
 0x1d5   :  { %v544_v45 = vpop.f32.mrf.mxu0  ;;  %v564_v48 = vpop.f32.mrf.mxu1 }
 0x1d6   :  { %v545_v46 = vadd.f32 %v544_v45, %v523_v44  ;;  %v652_v44 = vld [vmem:[#allocation16] sm:$0x3] }
 0x1d8   :  { %v565_v52 = vadd.f32 %v564_v48, %v545_v46 }
 0x1da   :  { %v612_v62 = vmul.f32 %v565_v52, %v565_v52 }
 0x1dc   :  { %v584_v50 = vpop.f32.mrf.mxu2  ;;  %v604_v51 = vpop.f32.mrf.mxu3 }
 0x1dd   :  { %v585_v55 = vadd.f32 %v584_v50, %v524_v47  ;;  %v797_v57 = vpop.f32.mrf.mxu0  ;;  %v817_v3 = vpop.f32.mrf.mxu1  ;;  %v954_v47 = vld [vmem:[%s1435_s9 + $0x2] sm:$0x3] }
 0x1de   :  { %v798_v60 = vadd.f32 %v797_v57, %v776_v56  ;;  %v892_v57 = vperm.slane %v954_v47, 0 }
 0x1df   :  { %v605_v58 = vadd.f32 %v604_v51, %v585_v55  ;;  %v654_v51 = vperm.slane %v652_v44, 0  ;;  %v863_v55 = vld [vmem:[#allocation15 + $0x2] sm:$0x3] }
 0x1e0   :  { %v1402_v5 = vadd.f32 %v817_v3, %v798_v60  ;;  %v900_v3 = vperm.slane %v863_v55, 1 }
 0x1e1   :  { %v609_v61 = vadd.f32 %v605_v58, %v565_v52  ;;  %v613_v63 = vmul.f32 %v605_v58, %v605_v58 }
 0x1e2   :  { %v867_v10 = vmul.f32 %v1402_v5, %v1402_v5 }
 0x1e3   :  { %610 = vadd.xlane.f32.xlu2 %v609_v61  ;;  %v614_v2 = vadd.f32 %v613_v63, %v612_v62 }
 0x1e4   :  { %v837_v4 = vpop.f32.mrf.mxu2  ;;  %v857_v7 = vpop.f32.mrf.mxu3 }
 0x1e5   :  { %v838_v6 = vadd.f32 %v837_v4, %v777_v59  ;;  %615 = vadd.xlane.f32.xlu0 %v614_v2  ;;  %v899_v2 = vperm.slane %v863_v55, 0 }
 0x1e7   :  { %v1404_v8 = vadd.f32 %v857_v7, %v838_v6 }
 0x1e9   :  { %v864_v9 = vadd.f32 %v1404_v8, %v1402_v5  ;;  %v868_v11 = vmul.f32 %v1404_v8, %v1404_v8 }
 0x1eb   :  { %865 = vadd.xlane.f32.xlu2 %v864_v9  ;;  %v869_v12 = vadd.f32 %v868_v11, %v867_v10  ;;  %v908_v10 = vld [vmem:[#allocation16 + $0x2] sm:$0x3] }
 0x1ed   :  { %870 = vadd.xlane.f32.xlu1 %v869_v12 }
 0x256   :  { %v611_v13 = vpop.xlane.xlu2 %610 }
 0x257   :  { %v617_v14 = vmul.f32 0.00390625, %v611_v13 }
 0x258   :  { %v616_v15 = vpop.xlane.xlu0 %615 }
 0x259   :  { %v618_v16 = vmul.f32 0.00390625, %v616_v15  ;;  %v619_v17 = vmul.f32 %v617_v14, %v617_v14  ;;  %v632_v35 = vsub.f32 %v565_v52, %v617_v14  ;;  %v633_v36 = vsub.f32 %v605_v58, %v617_v14 }
 0x25a   :  { %v655_v52 = vperm.slane %v652_v44, 1  ;;  %v893_v58 = vperm.slane %v954_v47, 1 }
 0x25b   :  { %v620_v18 = vsub.f32 %v618_v16, %v619_v17  ;;  %v911_v16 = vperm.slane %v908_v10, 1 }
 0x25d   :  { %v621_v19 = vadd.f32 1e-05, %v620_v18 }
 0x25e   :  { %v866_v20 = vpop.xlane.xlu2 %865 }
 0x25f   :  { %975 = vrsqrt.f32 %v621_v19  ;;  %v872_v21 = vmul.f32 0.00390625, %v866_v20  ;;  %vm628_vm11 = vweird.f32 %v621_v19 }
 0x260   :  { %v871_v22 = vpop.xlane.xlu1 %870 }
 0x261   :  { %v873_v24 = vmul.f32 0.00390625, %v871_v22  ;;  %v874_v25 = vmul.f32 %v872_v21, %v872_v21  ;;  %v887_v59 = vsub.f32 %v1402_v5, %v872_v21  ;;  %v888_v60 = vsub.f32 %v1404_v8, %v872_v21  ;;  %v970_v21 = vld [vmem:[%s1438_s12] ss:$0 sm:$0xff] }
 0x262   :  { %v910_v5 = vperm.slane %v908_v10, 0 }
 0x263   :  { %v875_v53 = vsub.f32 %v873_v24, %v874_v25 }
 0x265   :  { %v976_v26 = vpop.eup %975  ;;  %v876_v54 = vadd.f32 1e-05, %v875_v53 }
 0x266   :  { %v623_v23 = vmul.f32 %v976_v26, %v621_v19  ;;  %vm629_vm10 = vweird.f32 %v976_v26 }
 0x267   :  { %977 = vrsqrt.f32 %v876_v54  ;;  %vm630_vm12 = vmor %vm628_vm11, %vm629_vm10  ;;  %vm883_vm14 = vweird.f32 %v876_v54 }
 0x268   :  { %v624_v27 = vmul.f32 %v976_v26, %v623_v23 }
 0x26a   :  { %v625_v28 = vmul.f32 0.5, %v624_v27 }
 0x26c   :  { %v626_v29 = vsub.f32 1.5, %v625_v28 }
 0x26d   :  { %v978_v31 = vpop.eup %977 }
 0x26e   :  { %v627_v32 = vmul.f32 %v976_v26, %v626_v29  ;;  %v878_v33 = vmul.f32 %v978_v31, %v876_v54  ;;  %vm884_vm13 = vweird.f32 %v978_v31 }
 0x26f   :  { %vm885_vm15 = vmor %vm883_vm14, %vm884_vm13 }
 0x270   :  { %v631_v39 = vsel %vm630_vm12, %v976_v26, %v627_v32  ;;  %v879_v40 = vmul.f32 %v978_v31, %v878_v33 }
 0x271   :  { %v634_v0 = vmul.f32 %v632_v35, %v631_v39  ;;  %v635_v41 = vmul.f32 %v633_v36, %v631_v39 }
 0x272   :  { %v880_v43 = vmul.f32 0.5, %v879_v40 }
 0x273   :  { %v641_v45 = vmul.f32 %v637_v37, %v634_v0  ;;  %v642_v46 = vmul.f32 %v638_v38, %v635_v41 }
 0x274   :  { %v881_v48 = vsub.f32 1.5, %v880_v43 }
 0x275   :  { %v648_v49 = vadd.f32 %v644_v42, %v641_v45  ;;  %v649_v50 = vadd.f32 %v645_v1, %v642_v46 }
 0x276   :  { %v882_v56 = vmul.f32 %v978_v31, %v881_v48 }
 0x277   :  { %v650_v61 = vmax.f32 %v648_v49, 0.0  ;;  %v651_v62 = vmax.f32 %v649_v50, 0.0 }
 0x278   :  { %v886_v63 = vsel %vm885_vm15, %v978_v31, %v882_v56 }
 0x279   :  { %v658_v4 = vmul.f32 %v654_v51, %v650_v61  ;;  %v659_v6 = vmul.f32 %v655_v52, %v651_v62  ;;  %v889_v7 = vmul.f32 %v887_v59, %v886_v63  ;;  %v890_v9 = vmul.f32 %v888_v60, %v886_v63 }
 0x27b   :  { %v660_v11 = vadd.f32 %v659_v6, %v658_v4  ;;  %v896_v12 = vmul.f32 %v892_v57, %v889_v7  ;;  %v897_v13 = vmul.f32 %v893_v58, %v890_v9 }
 0x27d   :  { %661 = vadd.xlane.f32.xlu2 %v660_v11  ;;  %v903_v14 = vadd.f32 %v899_v2, %v896_v12  ;;  %v904_v15 = vadd.f32 %v900_v3, %v897_v13 }
 0x27f   :  { %v905_v8 = vmax.f32 %v903_v14, 0.0  ;;  %v906_v17 = vmax.f32 %v904_v15, 0.0 }
 0x281   :  { %v914_v18 = vmul.f32 %v910_v5, %v905_v8  ;;  %v915_v19 = vmul.f32 %v911_v16, %v906_v17 }
 0x283   :  { %v916_v20 = vadd.f32 %v915_v19, %v914_v18 }
 0x285   :  { %917 = vadd.xlane.f32.xlu0 %v916_v20 }
 0x2f0   :  { %v662_v22 = vpop.xlane.xlu2 %661 }
 0x2f8   :  { %v918_v24 = vpop.xlane.xlu0 %917 }
 0x2f9   :  { %v920_v25 = vsel %vm919_vm0, %v662_v22, %v918_v24 }
 0x2fa   :  { %v925_v53 = vadd.f32 %v970_v21, %v920_v25 }
 0x2fc   :  { %927 = vst.msk [vmem:[%s1439_s13] sm:$0xff] %vm926_vm1, %v925_v53 }
 0x2fd   :  { %932 = vsyncpa [#allocation3], 1 }
 0x2fe   :  { %933 = vsyncpa [#allocation5], 1 }
 0x2ff   :  { %934 = vsyncpa [#allocation8], 1 }
 0x300   :  { %935 = vsyncpa [#allocation11], 1 }
 0x301   :  { %936 = vsyncpa [#allocation14], 1 }
 0x302   :  { %937 = vsyncpa [#allocation17], 1 }

</bundles_post_ra>
